<compile_context>
chip_gen: v6e
topology: v6e:2x2x1
jax: 0.10.0
libtpu: 0.0.40
codegen_flags: <defaults>
</compile_context>

<pallas_src>
import functools

import jax
import jax.numpy as jnp
from jax.experimental import pallas as pl
from jax.experimental.pallas import tpu as pltpu


def _distill_kl_kernel(ys_ref, yt_ref, out_ref, *, inv_t, scale, batch,
                       needs_mask):
    i = pl.program_id(0)

    @pl.when(i == 0)
    def _init():
        out_ref[...] = jnp.zeros_like(out_ref)

    tb = ys_ref.shape[0]
    # (TB, C) tile in VMEM; all reductions are along the lane (class) axis.
    ys = ys_ref[...].astype(jnp.float32) * inv_t
    yt = yt_ref[...].astype(jnp.float32) * inv_t

    # Student: log_softmax pieces (shifted logits + per-row logsumexp).
    ys_max = jnp.max(ys, axis=-1, keepdims=True)
    ys_shift = ys - ys_max
    ys_lse = jnp.log(jnp.sum(jnp.exp(ys_shift), axis=-1, keepdims=True))

    # Teacher: shifted exponentials + log-partition, class axis.
    yt_max = jnp.max(yt, axis=-1, keepdims=True)
    yt_shift = yt - yt_max
    yt_exp = jnp.exp(yt_shift)
    yt_sum = jnp.sum(yt_exp, axis=-1, keepdims=True)
    yt_log_sum = jnp.log(yt_sum)

    # log p_t - log p_s = (yt_shift - yt_log_sum) - (ys_shift - ys_lse)
    #                   = (yt_shift - ys_shift) + (ys_lse - yt_log_sum)
    # -> one full-width subtract + one broadcast add instead of three
    #    full-width subtracts.
    diff = (yt_shift - ys_shift) + (ys_lse - yt_log_sum)

    # sum_c p_t * diff = (1/yt_sum) * sum_c yt_exp * diff
    # -> normalize AFTER the class reduce: per-row reciprocal only (TB values),
    #    no full-width divide and one fewer full-width multiply.
    row_num = jnp.sum(yt_exp * diff, axis=-1, keepdims=True)
    row_kl = row_num * (1.0 / yt_sum)

    if needs_mask:
        # Last batch tile is padded; padded rows may hold garbage -> zero them.
        rows = jax.lax.broadcasted_iota(jnp.int32, (tb, 1), 0)
        valid = (i * tb + rows) < batch
        row_kl = jnp.where(valid, row_kl, 0.0)

    out_ref[...] += jnp.sum(row_kl, keepdims=True)

    @pl.when(i == pl.num_programs(0) - 1)
    def _finalize():
        out_ref[...] = out_ref[...] * scale


def _choose_tile_rows(batch, num_classes, itemsize):
    # Keep 2 inputs x 2 pipeline buffers x (TB x C x itemsize) under ~12 MiB:
    # fits every generation's scoped-VMEM default (v5e 16 MiB, v6e/v7x 32 MiB).
    budget = 12 * 1024 * 1024
    per_row = 4 * num_classes * itemsize
    max_rows = max(budget // per_row, 1)
    sublane = {4: 8, 2: 16, 1: 32}.get(itemsize, 8)
    tb = min(batch, max_rows, 1024)
    if tb < batch:
        # Sublane-align blocks that don't cover the whole batch.
        tb = max((tb // sublane) * sublane, sublane)
    return tb


def distill_kl(y_s, y_t, T, tile_rows=None):
    """Pallas implementation of DistillKL.forward. Returns a float32 scalar."""
    assert y_s.shape == y_t.shape and y_s.ndim == 2
    B, C = y_s.shape
    itemsize = jnp.dtype(y_s.dtype).itemsize
    tb = tile_rows if tile_rows is not None else _choose_tile_rows(B, C, itemsize)
    tb = min(int(tb), B)
    grid = (pl.cdiv(B, tb),)

    kernel = functools.partial(
        _distill_kl_kernel,
        inv_t=1.0 / float(T),
        scale=(float(T) * float(T)) / float(B),
        batch=B,
        needs_mask=(B % tb != 0),
    )

    loss = pl.pallas_call(
        kernel,
        out_shape=jax.ShapeDtypeStruct((1, 1), jnp.float32),
        grid_spec=pltpu.PrefetchScalarGridSpec(
            num_scalar_prefetch=0,
            grid=grid,
            in_specs=[
                pl.BlockSpec((tb, C), lambda i: (i, 0)),
                pl.BlockSpec((tb, C), lambda i: (i, 0)),
            ],
            # Same output block for every grid step -> VMEM-resident scalar
            # accumulator, written back to HBM once at the end.
            out_specs=pl.BlockSpec((1, 1), lambda i: (0, 0)),
        ),
        compiler_params=pltpu.CompilerParams(
            # Grid axis carries the accumulator -> must be "arbitrary".
            dimension_semantics=("arbitrary",),
            vmem_limit_bytes=32 * 1024 * 1024,
        ),
        cost_estimate=pl.CostEstimate(
            flops=12 * B * C,
            transcendentals=2 * B * C,
            bytes_accessed=2 * B * C * itemsize + 4,
        ),
    )(y_s, y_t)

    return loss[0, 0]


def _distill_kl_ref(y_s, y_t, T):
    # Pure-JAX reference for a sanity check.
    log_p_s = jax.nn.log_softmax(y_s.astype(jnp.float32) / T, axis=1)
    p_t = jax.nn.softmax(y_t.astype(jnp.float32) / T, axis=1)
    log_p_t = jax.nn.log_softmax(y_t.astype(jnp.float32) / T, axis=1)
    return jnp.sum(p_t * (log_p_t - log_p_s)) * T**2 / y_s.shape[0]


if __name__ == "__main__":
    T = 4.0
    key = jax.random.PRNGKey(0)

    # 1) Small (batch, num_classes) logits matching the module's (B, C) contract.
    B, C = 8, 32
    k1, k2 = jax.random.split(key)
    y_s = jax.random.normal(k1, (B, C), dtype=jnp.float32)
    y_t = jax.random.normal(k2, (B, C), dtype=jnp.float32)
    loss = distill_kl(y_s, y_t, T)
    jax.block_until_ready(loss)
    ref = _distill_kl_ref(y_s, y_t, T)
    assert jnp.allclose(loss, ref, rtol=1e-5, atol=1e-5), (loss, ref)

    # 2) Multi-tile (pipelined, accumulating) grid path, B divisible by tile.
    B2, C2 = 64, 128
    k3, k4 = jax.random.split(k2)
    y_s2 = jax.random.normal(k3, (B2, C2), dtype=jnp.float32)
    y_t2 = jax.random.normal(k4, (B2, C2), dtype=jnp.float32)
    loss2 = distill_kl(y_s2, y_t2, T, tile_rows=16)  # grid=(4,)
    jax.block_until_ready(loss2)
    ref2 = _distill_kl_ref(y_s2, y_t2, T)
    assert jnp.allclose(loss2, ref2, rtol=1e-5, atol=1e-5), (loss2, ref2)

    # 3) Batch NOT divisible by the tile -> exercises the padded-row mask path.
    B3, C3 = 20, 96
    k5, k6 = jax.random.split(k4)
    y_s3 = jax.random.normal(k5, (B3, C3), dtype=jnp.float32)
    y_t3 = jax.random.normal(k6, (B3, C3), dtype=jnp.float32)
    loss3 = distill_kl(y_s3, y_t3, T, tile_rows=8)  # grid=(3,), last tile padded
    jax.block_until_ready(loss3)
    ref3 = _distill_kl_ref(y_s3, y_t3, T)
    assert jnp.allclose(loss3, ref3, rtol=1e-5, atol=1e-5), (loss3, ref3)

    # 4) bf16 logits stay bf16 on the HBM->VMEM wire, upcast in-kernel.
    B4, C4 = 16, 100
    k7, k8 = jax.random.split(k6)
    y_s4 = jax.random.normal(k7, (B4, C4), dtype=jnp.bfloat16)
    y_t4 = jax.random.normal(k8, (B4, C4), dtype=jnp.bfloat16)
    loss4 = distill_kl(y_s4, y_t4, T)
    jax.block_until_ready(loss4)
    ref4 = _distill_kl_ref(y_s4, y_t4, T)
    assert jnp.allclose(loss4, ref4, rtol=1e-4, atol=1e-5), (loss4, ref4)

    print("KERNEL_OK")
</pallas_src>

<mosaic_0001>
module attributes {stable_mosaic.version = 11 : i64} {
  func.func @_distill_kl_kernel(%arg0: i32, %arg1: memref<8x32xf32, #tpu.memory_space<vmem>>, %arg2: memref<8x32xf32, #tpu.memory_space<vmem>>, %arg3: memref<1x1xf32, #tpu.memory_space<vmem>>) attributes {dimension_semantics = [#tpu.dimension_semantics<arbitrary>], iteration_bounds = array<i64: 1>, scalar_prefetch = 0 : i64, scratch_operands = 0 : i64, tpu.core_type = #tpu.core_type<tc>, window_params = [{transform_indices = @transform_0, window_bounds = array<i64: 8, 32>}, {transform_indices = @transform_1, window_bounds = array<i64: 8, 32>}, {pipeline_mode = #tpu.pipeline_mode<synchronous>, transform_indices = @transform_2, window_bounds = array<i64: 1, 1>}]} {
    %c0_i32 = arith.constant 0 : i32
    %0 = arith.cmpi eq, %arg0, %c0_i32 : i32
    %1 = arith.extui %0 : i1 to i32
    %c0_i32_0 = arith.constant 0 : i32
    %2 = arith.cmpi ne, %1, %c0_i32_0 : i32
    scf.if %2 {
      %cst_18 = arith.constant 0.000000e+00 : f32
      %46 = vector.broadcast %cst_18 : f32 to vector<1x1xf32>
      %c0_19 = arith.constant 0 : index
      %c0_20 = arith.constant 0 : index
      %47 = vector.load %arg3[%c0_19, %c0_20] : memref<1x1xf32, #tpu.memory_space<vmem>>, vector<1x1xf32>
      tpu.vector_store %arg3[%c0_19, %c0_20], %46 {strides = array<i32>} : memref<1x1xf32, #tpu.memory_space<vmem>>, vector<1x1xf32>,
    } else {
    }
    %c0 = arith.constant 0 : index
    %c0_1 = arith.constant 0 : index
    %3 = vector.load %arg1[%c0, %c0_1] : memref<8x32xf32, #tpu.memory_space<vmem>>, vector<8x32xf32>
    %cst = arith.constant 2.500000e-01 : f32
    %4 = vector.broadcast %cst : f32 to vector<8x32xf32>
    %5 = arith.mulf %3, %4 : vector<8x32xf32>
    %c0_2 = arith.constant 0 : index
    %c0_3 = arith.constant 0 : index
    %6 = vector.load %arg2[%c0_2, %c0_3] : memref<8x32xf32, #tpu.memory_space<vmem>>, vector<8x32xf32>
    %cst_4 = arith.constant 2.500000e-01 : f32
    %7 = vector.broadcast %cst_4 : f32 to vector<8x32xf32>
    %8 = arith.mulf %6, %7 : vector<8x32xf32>
    %cst_5 = arith.constant dense<0xFF800000> : vector<8xf32>
    %9 = vector.multi_reduction <maximumf>, %5, %cst_5 [1] : vector<8x32xf32> to vector<8xf32>
    %10 = vector.shape_cast %9 : vector<8xf32> to vector<8x1xf32>
    %11 = vector.broadcast %10 : vector<8x1xf32> to vector<8x32xf32>
    %12 = arith.subf %5, %11 : vector<8x32xf32>
    %13 = math.exp %12 : vector<8x32xf32>
    %cst_6 = arith.constant dense<0.000000e+00> : vector<8xf32>
    %14 = vector.multi_reduction <add>, %13, %cst_6 [1] : vector<8x32xf32> to vector<8xf32>
    %15 = vector.shape_cast %14 : vector<8xf32> to vector<8x1xf32>
    %16 = math.log %15 : vector<8x1xf32>
    %cst_7 = arith.constant dense<0xFF800000> : vector<8xf32>
    %17 = vector.multi_reduction <maximumf>, %8, %cst_7 [1] : vector<8x32xf32> to vector<8xf32>
    %18 = vector.shape_cast %17 : vector<8xf32> to vector<8x1xf32>
    %19 = vector.broadcast %18 : vector<8x1xf32> to vector<8x32xf32>
    %20 = arith.subf %8, %19 : vector<8x32xf32>
    %21 = math.exp %20 : vector<8x32xf32>
    %cst_8 = arith.constant dense<0.000000e+00> : vector<8xf32>
    %22 = vector.multi_reduction <add>, %21, %cst_8 [1] : vector<8x32xf32> to vector<8xf32>
    %23 = vector.shape_cast %22 : vector<8xf32> to vector<8x1xf32>
    %24 = math.log %23 : vector<8x1xf32>
    %25 = arith.subf %20, %12 : vector<8x32xf32>
    %26 = arith.subf %16, %24 : vector<8x1xf32>
    %27 = vector.broadcast %26 : vector<8x1xf32> to vector<8x32xf32>
    %28 = arith.addf %25, %27 : vector<8x32xf32>
    %29 = arith.mulf %21, %28 : vector<8x32xf32>
    %cst_9 = arith.constant dense<0.000000e+00> : vector<8xf32>
    %30 = vector.multi_reduction <add>, %29, %cst_9 [1] : vector<8x32xf32> to vector<8xf32>
    %31 = vector.shape_cast %30 : vector<8xf32> to vector<8x1xf32>
    %cst_10 = arith.constant 1.000000e+00 : f32
    %32 = vector.broadcast %cst_10 : f32 to vector<8x1xf32>
    %33 = arith.divf %32, %23 : vector<8x1xf32>
    %34 = arith.mulf %31, %33 : vector<8x1xf32>
    %c0_11 = arith.constant 0 : index
    %c0_12 = arith.constant 0 : index
    %35 = vector.load %arg3[%c0_11, %c0_12] : memref<1x1xf32, #tpu.memory_space<vmem>>, vector<1x1xf32>
    %36 = vector.shape_cast %34 : vector<8x1xf32> to vector<1x8x1xf32>
    %cst_13 = arith.constant dense<0.000000e+00> : vector<1xf32>
    %37 = vector.multi_reduction <add>, %36, %cst_13 [1, 2] : vector<1x8x1xf32> to vector<1xf32>
    %38 = vector.shape_cast %37 : vector<1xf32> to vector<1x1x1xf32>
    %39 = vector.extract %38[0, 0, 0] : f32 from vector<1x1x1xf32>
    %40 = vector.broadcast %39 : f32 to vector<1x1xf32>
    %41 = arith.addf %35, %40 : vector<1x1xf32>
    %c0_14 = arith.constant 0 : index
    %c0_15 = arith.constant 0 : index
    %42 = vector.load %arg3[%c0_14, %c0_15] : memref<1x1xf32, #tpu.memory_space<vmem>>, vector<1x1xf32>
    tpu.vector_store %arg3[%c0_14, %c0_15], %41 {strides = array<i32>} : memref<1x1xf32, #tpu.memory_space<vmem>>, vector<1x1xf32>,
    %c0_i32_16 = arith.constant 0 : i32
    %43 = arith.cmpi eq, %arg0, %c0_i32_16 : i32
    %44 = arith.extui %43 : i1 to i32
    %c0_i32_17 = arith.constant 0 : i32
    %45 = arith.cmpi ne, %44, %c0_i32_17 : i32
    scf.if %45 {
      %c0_18 = arith.constant 0 : index
      %c0_19 = arith.constant 0 : index
      %46 = vector.load %arg3[%c0_18, %c0_19] : memref<1x1xf32, #tpu.memory_space<vmem>>, vector<1x1xf32>
      %cst_20 = arith.constant 2.000000e+00 : f32
      %47 = vector.broadcast %cst_20 : f32 to vector<1x1xf32>
      %48 = arith.mulf %46, %47 : vector<1x1xf32>
      %c0_21 = arith.constant 0 : index
      %c0_22 = arith.constant 0 : index
      %49 = vector.load %arg3[%c0_21, %c0_22] : memref<1x1xf32, #tpu.memory_space<vmem>>, vector<1x1xf32>
      tpu.vector_store %arg3[%c0_21, %c0_22], %48 {strides = array<i32>} : memref<1x1xf32, #tpu.memory_space<vmem>>, vector<1x1xf32>,
    } else {
    }
    return
  }
  func.func @transform_0(%arg0: i32) -> (i32, i32) {
    %c0_i32 = arith.constant 0 : i32
    %c0_i32_0 = arith.constant 0 : i32
    return %arg0, %c0_i32 : i32, i32
  }
  func.func @transform_1(%arg0: i32) -> (i32, i32) {
    %c0_i32 = arith.constant 0 : i32
    %c0_i32_0 = arith.constant 0 : i32
    return %arg0, %c0_i32 : i32, i32
  }
  func.func @transform_2(%arg0: i32) -> (i32, i32) {
    %c0_i32 = arith.constant 0 : i32
    %c0_i32_0 = arith.constant 0 : i32
    %c0_i32_1 = arith.constant 0 : i32
    return %c0_i32, %c0_i32_0 : i32, i32
  }
}

</mosaic_0001>

<bundles_post_ra>
// kernel: tpu_custom_call.1
= control target key start
LH: loop header
LB: loop body
LE: loop exit
PB: predicated region body
PF: predicated region fallthrough
CT: control target
= control target key end

     0   :  { %7 = vsyncpa [#allocation3], 0  ;;  %s235_s0 = inlined_call_operand.hbm [shape: f32[8,32], index: 0, kind: input, shape index: {}]   ;;  %s236_s1 = inlined_call_operand.hbm [shape: f32[8,32], index: 1, kind: input, shape index: {}]   ;;  %s237_s2 = inlined_call_operand.hbm [shape: f32[1,1], index: 2, kind: output, shape index: {}]  }
   0x1   :  { %8 = vsyncpa [#allocation6], 0 }
   0x2   :  { %9 = vsyncpa [#allocation4], 0  ;;  %s199_s9 = smov [#allocation2]   ;;  %s200_s11 = smov [#allocation5]  }
   0x3   :  { %s16_s10 = sshll.u32 %s199_s9, 4  ;;  %s26_s12 = sshll.u32 %s200_s11, 4  ;;  %s17_s10 = int_to_ptr.vmem [resolvable:$true] %s16_s10  ;;  %s27_s12 = int_to_ptr.vmem [resolvable:$true] %s26_s12 }
   0x4   :  { %s141_s13 = scalar_lea.vmem %s17_s10, 128  ;;  %p146_p1 = scmp.lt.s32.totalorder %s17_s10, %s17_s10 }
   0x5   :  { %p142_p0 = scmp.ne.s32.totalorder %s17_s10, %s141_s13  ;;  %p147_p2 = scmp.lt.s32.totalorder %s141_s13, %s141_s13 }
   0x7   :  { %p148_p3 = por %p147_p2, %p146_p1 }
   0x9   :  { %p149_p4 = pnand %p148_p3, %p142_p0 }
   0xb   :  { %152 = shalt.err (!%p149_p4)
}
   0xc   :  { %19 = dma.hbm_to_vmem [thread:$0]  %s235_s0, 128, %s17_s10, [#allocation3]  }
   0xd   :  { %s161_s16 = scalar_lea.vmem %s27_s12, 128  ;;  %p166_p6 = scmp.lt.s32.totalorder %s27_s12, %s27_s12 }
   0xe   :  { %p162_p5 = scmp.ne.s32.totalorder %s27_s12, %s161_s16  ;;  %p167_p7 = scmp.lt.s32.totalorder %s161_s16, %s161_s16 }
  0x10   :  { %p168_p8 = por %p167_p7, %p166_p6 }
  0x12   :  { %p169_p9 = pnand %p168_p8, %p162_p5 }
  0x14   :  { %172 = shalt.err (!%p169_p9)
}
  0x15   :  { %29 = dma.hbm_to_vmem [thread:$0]  %s236_s1, 128, %s27_s12, [#allocation6]  }
  0x16   :  { %193 = dma.done.wait [#allocation3], 128  }
  0x17   :  { %194 = vsyncadd [#allocation3], 4294967168 }
  0x18   :  { %195 = dma.done.wait [#allocation6], 128  }
  0x19   :  { %196 = vsyncadd [#allocation6], 4294967168  ;;  %v42_v0 = vld [vmem:[#allocation2] sm:$0xff]  ;;  %vm46_vm0 = vcmask 261120   ;;  %v44_v1 = vld [vmem:[#allocation5] sm:$0xff]  ;;  %vm80_vm1 = vcmask 7168  }
  0x1a   :  { %v43_v2 = vmul.f32 0.25, %v42_v0  ;;  %v45_v3 = vmul.f32 0.25, %v44_v1  ;;  %vm40_vm2 = vcmask 0   ;;  %v201_v31 = vmov 0.0   ;;  %s202_s1 = smov [#allocation7]  }
  0x1b   :  { %41 = vst.msk [vmem:[#allocation7] sm:$0x1] %vm40_vm2, %v201_v31  ;;  %s107_s19 = sshll.u32 %s202_s1, 4  ;;  %s108_s19 = int_to_ptr.vmem [resolvable:$true] %s107_s19 }
  0x1c   :  { %v47_v4 = vsel %vm46_vm0, %v43_v2, -inf  ;;  %v58_v5 = vsel %vm46_vm0, %v45_v3, -inf  ;;  %s173_s20 = scalar_lea.vmem %s108_s19, 16  ;;  %s177_s21 = scalar_lea.vmem %s108_s19, 32 }
  0x1d   :  { %48 = vmax.xlane.f32.xlu0 %v47_v4  ;;  %p174_p10 = scmp.ne.s32.totalorder %s108_s19, %s173_s20  ;;  %p178_p11 = scmp.lt.s32.totalorder %s108_s19, %s108_s19 }
  0x1e   :  { %p179_p12 = scmp.lt.s32.totalorder %s177_s21, %s173_s20 }
  0x20   :  { %p180_p13 = por %p179_p12, %p178_p11 }
  0x21   :  { %59 = vmax.xlane.f32.xlu0 %v58_v5 }
  0x22   :  { %v79_v39 = vld [vmem:[#allocation7] sm:$0x1]  ;;  %p181_p0 = pnand %p180_p13, %p174_p10 }
  0xa6   :  { %v49_v6 = vpop.xlane.xlu0 %48 }
  0xa7   :  { %v50_v7 = vsub.f32 %v43_v2, %v49_v6 }
  0xa9   :  { %v51_v8 = vmul.f32 1.442695, %v50_v7 }
  0xaa   :  { %v60_v9 = vpop.xlane.xlu0 %59 }
  0xab   :  { %123 = vpow2.f32 %v51_v8  ;;  %v61_v10 = vsub.f32 %v45_v3, %v60_v9 }
  0xad   :  { %v62_v11 = vmul.f32 1.442695, %v61_v10  ;;  %v69_v12 = vsub.f32 %v61_v10, %v50_v7 }
  0xaf   :  { %125 = vpow2.f32 %v62_v11 }
  0xb8   :  { %v124_v13 = vpop.eup %123 }
  0xb9   :  { %v53_v14 = vsel %vm46_vm0, %v124_v13, 0.0 }
  0xba   :  { %54 = vadd.xlane.f32.xlu1 %v53_v14 }
  0xbc   :  { %v126_v15 = vpop.eup %125 }
  0xbd   :  { %v64_v16 = vsel %vm46_vm0, %v126_v15, 0.0 }
  0xbe   :  { %65 = vadd.xlane.f32.xlu1 %v64_v16 }
 0x143   :  { %v55_v17 = vpop.xlane.xlu1 %54 }
 0x144   :  { %127 = vlog2.f32 %v55_v17 }
 0x147   :  { %v66_v18 = vpop.xlane.xlu1 %65 }
 0x148   :  { %129 = vlog2.f32 %v66_v18 }
 0x149   :  { %131 = vrcp.f32 %v66_v18 }
 0x151   :  { %v128_v19 = vpop.eup %127 }
 0x152   :  { %v57_v21 = vmul.f32 0.6931472, %v128_v19 }
 0x155   :  { %v130_v20 = vpop.eup %129 }
 0x156   :  { %v68_v22 = vmul.f32 0.6931472, %v130_v20  ;;  %v132_v27 = vpop.eup %131 }
 0x158   :  { %v70_v23 = vsub.f32 %v57_v21, %v68_v22 }
 0x15a   :  { %v71_v24 = vadd.f32 %v70_v23, %v69_v12 }
 0x15c   :  { %v72_v25 = vmul.f32 %v126_v15, %v71_v24 }
 0x15e   :  { %v73_v26 = vsel %vm46_vm0, %v72_v25, 0.0 }
 0x15f   :  { %74 = vadd.xlane.f32.xlu0 %v73_v26 }
 0x1e8   :  { %v75_v28 = vpop.xlane.xlu0 %74 }
 0x1e9   :  { %v78_v29 = vmul.f32 %v132_v27, %v75_v28 }
 0x1eb   :  { %v81_v30 = vsel %vm80_vm1, %v78_v29, 0.0 }
 0x1ec   :  { %82 = vadd.xlane.f32.xlu1 %v81_v30 }
 0x275   :  { %v83_v32 = vpop.xlane.xlu1 %82 }
 0x276   :  { %v84_v33 = vrot.slane %v83_v32, 4 }
 0x278   :  { %v85_v34 = vadd.f32 %v84_v33, %v83_v32 }
 0x27a   :  { %v86_v35 = vrot.slane %v85_v34, 2 }
 0x27c   :  { %v87_v36 = vadd.f32 %v86_v35, %v85_v34 }
 0x27e   :  { %v88_v37 = vrot.slane %v87_v36, 1 }
 0x280   :  { %v89_v38 = vadd.f32 %v88_v37, %v87_v36 }
 0x282   :  { %117 = vpush %v89_v38 }
 0x2b3   :  { %s118_s0 = spop %117 }
 0x2b4   :  { %v91_v40 = vstv %s118_s0 }
 0x2b5   :  { %v92_v41 = vadd.f32 %v91_v40, %v79_v39 }
 0x2b7   :  { %94 = vst.msk [vmem:[#allocation7] sm:$0x1] %vm40_vm2, %v92_v41 }
 0x2be   :  { %v98_v42 = vld [vmem:[#allocation7] sm:$0x1] }
 0x2bf   :  { %v99_v43 = vmul.f32 2.0, %v98_v42 }
 0x2c1   :  { %100 = vst.msk [vmem:[#allocation7] sm:$0x1] %vm40_vm2, %v99_v43 }
 0x2c2   :  { %184 = shalt.err (!%p181_p0)
}
 0x2c3   :  { %110 = dma.vmem_to_hbm [thread:$0]  %s108_s19, 16, %s237_s2, [#allocation4]  }
 0x2c4   :  { %197 = dma.done.wait [#allocation4], 16  }
 0x2c5   :  { %198 = vsyncadd [#allocation4], 4294967280 }
 0x2c6   :  { %114 = vsyncpa [#allocation3], 1 }
 0x2c7   :  { %115 = vsyncpa [#allocation6], 1 }
 0x2c8   :  { %116 = vsyncpa [#allocation4], 1 }

</bundles_post_ra>
